<compile_context>
chip_gen: v5e
topology: v5e:2x2
jax: 0.10.0
libtpu: 0.0.40
codegen_flags: <defaults>
</compile_context>

<pallas_src>
import functools

import jax
import jax.numpy as jnp
from jax.experimental import pallas as pl
from jax.experimental.pallas import tpu as pltpu


def _round_up(x, m):
    return (x + m - 1) // m * m


def _vmem_capacity_bytes():
    """Physical VMEM per TensorCore; conservative (v7x-sized) fallback if the query fails."""
    try:
        return int(pltpu.get_tpu_info().vmem_capacity_bytes)
    except Exception:
        return 64 * 1024 * 1024


def _choose_tile_n(n, k, f_in, f_hid, f_out, nei_itemsize, h_itemsize, vmem_cap):
    """Node-tile size for the streaming grid, derived from a real VMEM budget.

    Per node row we count everything live in VMEM at once, with every last dim
    rounded up to the 128-lane layout (a 32-wide feature dim really occupies 128
    lanes in VMEM):
      * double-buffered nei and h input blocks (streaming dtype),
      * the f32 z intermediate of the neighbor MLP (tile_n*k, F_hid),
      * the pooled intermediate and the double-buffered f32 output block.
    The sum is capped at ~50% of physical VMEM so weights, compiler scratch and the
    scoped vmem limit keep headroom (tight on v7x's 64 MiB; v5e/v6e's 128 MiB then
    naturally pick larger tiles and fewer grid steps, amortizing the ~0.35us/step
    overhead toward the HBM roofline).
    """
    lane = 128
    f_in_l = _round_up(f_in, lane)
    f_hid_l = _round_up(f_hid, lane)
    f_out_l = _round_up(f_out, lane)
    bytes_per_row = (
        2 * k * f_in_l * nei_itemsize        # nei block, double-buffered
        + 2 * f_in_l * h_itemsize            # h block, double-buffered
        + k * f_hid_l * 4                    # f32 z = relu(nei @ W1 + b1)
        + f_hid_l * 4                        # f32 pooled
        + 2 * f_out_l * 4                    # output block, double-buffered (f32)
    )
    budget = vmem_cap // 2
    t = max(8, min(budget // bytes_per_row, 8192) // 8 * 8)
    n8 = _round_up(n, 8)
    t = min(t, n8)
    # Keep >= 4 grid steps (>= 2 per v7x TensorCore) when n allows, so BlockSpec
    # double-buffering overlaps the nei DMA with compute on every core.
    min_steps = 4
    if pl.cdiv(n, t) < min_steps and n8 > 8:
        t = max(8, _round_up(pl.cdiv(n8, min_steps), 8))
        t = min(t, n8)
    return t


def pooling_aggregator_kernel(nei_ref, h_ref, w1_ref, b1_ref,
                              w2a_ref, w2b_ref, b2_ref, o_ref,
                              *, tile_n, k):
    # Neighbor MLP: one big 2-D MXU matmul on this tile's flattened (tile_n*k, F_in)
    # block.  bf16 (or f32) blocks feed the MXU directly — no VPU upcast pass, no
    # extra f32 copy of the biggest block in VMEM; accumulation is f32.
    z = jnp.dot(nei_ref[...], w1_ref[...], preferred_element_type=jnp.float32)
    z = jnp.maximum(z + b1_ref[...], 0.0)                          # (tile_n*k, F_hid) f32
    # Reshape only for the neighbor max-pool (free layout op when k % 8 == 0).
    pooled = jnp.max(z.reshape(tile_n, k, z.shape[-1]), axis=1)    # (tile_n, F_hid)

    # concat([pooled, h]) @ W2 + b2, split into two matmuls (no concat needed).
    out = (jnp.dot(pooled, w2a_ref[...], preferred_element_type=jnp.float32)
           + jnp.dot(h_ref[...], w2b_ref[...], preferred_element_type=jnp.float32)
           + b2_ref[...])                                          # (tile_n, F_out)

    # Module activation = relu.
    o_ref[...] = jnp.maximum(out, 0.0).astype(o_ref.dtype)


def _probe_copy_kernel(x_ref, o_ref):
    o_ref[...] = x_ref[...]


@functools.lru_cache(maxsize=None)
def _single_buffered_weights_supported():
    """Once-per-process, narrowly-scoped probe: can this jax/backend single-buffer a
    grid-invariant BlockSpec via pipeline_mode=pl.Buffered(1)?  A tiny cached
    micro-compile is used so a lowering-time rejection is caught here, while real-kernel
    failures are never masked by a silent fallback path."""
    if not hasattr(pl, "Buffered"):
        return False
    try:
        spec = pl.BlockSpec((8, 128), lambda i: (0, 0), pipeline_mode=pl.Buffered(1))
        call = pl.pallas_call(
            _probe_copy_kernel,
            out_shape=jax.ShapeDtypeStruct((8, 128), jnp.float32),
            grid_spec=pltpu.PrefetchScalarGridSpec(
                num_scalar_prefetch=0,
                grid=(1,),
                in_specs=[spec],
                out_specs=pl.BlockSpec((8, 128), lambda i: (0, 0)),
            ),
        )
        jax.jit(call).lower(jax.ShapeDtypeStruct((8, 128), jnp.float32)).compile()
        return True
    except Exception:
        return False


def _weight_spec_factory():
    if _single_buffered_weights_supported():
        # Grid-invariant operands: constant index_map, never re-fetched — one VMEM
        # buffer is enough.  Matters most for large F on v7x's 64 MiB VMEM.
        def wspec(shape):
            return pl.BlockSpec(shape, lambda i: (0,) * len(shape),
                                pipeline_mode=pl.Buffered(1))
    else:
        def wspec(shape):
            return pl.BlockSpec(shape, lambda i: (0,) * len(shape))
    return wspec


def pooling_aggregator(nei, h, w1, b1, w2, b2, *, tile_n=None, out_dtype=None):
    """PoolingAggregator forward.

    nei: (N, K, F_in) neighbor messages (f32 or bf16; bf16 halves HBM bytes of the
         dominant stream), h: (N, F_in) node features.
    w1: (F_hid, F_in) / b1: (F_hid,)          torch-layout MLP Linear (F_hid == F_in).
    w2: (F_out, F_hid + F_in) / b2: (F_out,)  torch-layout aggregator Linear.
    Returns (N, F_out) in `out_dtype` (defaults to w2.dtype).
    """
    N, K, F_in = nei.shape
    F_hid = w1.shape[0]
    F_out = w2.shape[0]
    assert w1.shape == (F_hid, F_in)
    assert w2.shape[1] == F_hid + F_in
    if out_dtype is None:
        out_dtype = w2.dtype

    f32 = jnp.float32
    bf16 = jnp.bfloat16

    # ---- weights: transpose to (in, out), split W2, match the streaming dtype ----
    # W1/W2b multiply the streamed blocks: store them bf16 when the stream is bf16 so
    # the MXU runs natively at bf16 rate and the resident weight blocks take half the
    # VMEM (accumulation stays f32).  W2a multiplies the f32 pooled intermediate.
    w1_dtype = bf16 if nei.dtype == bf16 else f32
    w2b_dtype = bf16 if h.dtype == bf16 else f32
    w1_t = w1.T.astype(w1_dtype)                    # (F_in, F_hid)
    w2a = w2[:, :F_hid].T.astype(f32)               # (F_hid, F_out) -> multiplies pooled
    w2b = w2[:, F_hid:].T.astype(w2b_dtype)         # (F_in,  F_out) -> multiplies h
    b1_2d = b1.astype(f32).reshape(1, F_hid)
    b2_2d = b2.astype(f32).reshape(1, F_out)

    # ---- neighbor axis: stream K as-is.  Only if K % 8 != 0 pay a one-off edge pad so
    # the in-kernel max-pool reshape stays a free layout op (edge rows never change max).
    K_eff = K
    if K % 8 != 0:
        K_eff = _round_up(K, 8)
        nei = jnp.pad(nei, ((0, 0), (0, K_eff - K), (0, 0)), mode="edge")

    # ---- flatten neighbors (free contiguous reshape, no copy): the MLP becomes one
    # (tile_n*K, F_in) @ (F_in, F_hid) MXU matmul per tile.
    nei_flat = nei.reshape(N * K_eff, F_in)

    # ---- node-axis tiling: no N padding, ragged last grid block; OOB rows dropped ----
    vmem_cap = _vmem_capacity_bytes()
    if tile_n is None:
        tile_n = _choose_tile_n(N, K_eff, F_in, F_hid, F_out,
                                nei.dtype.itemsize, h.dtype.itemsize, vmem_cap)
    assert tile_n % 8 == 0
    grid_steps = pl.cdiv(N, tile_n)

    wspec = _weight_spec_factory()
    vmem_limit_bytes = int(min(vmem_cap * 3 // 4, 128 * 1024 * 1024))

    out = pl.pallas_call(
        functools.partial(pooling_aggregator_kernel, tile_n=tile_n, k=K_eff),
        out_shape=jax.ShapeDtypeStruct((N, F_out), out_dtype),
        grid_spec=pltpu.PrefetchScalarGridSpec(
            num_scalar_prefetch=0,
            grid=(grid_steps,),
            in_specs=[
                # nei (flattened): the dominant, streamed operand.  If profiling shows
                # exposed DMA here, try pipeline_mode=pl.Buffered(3) on this spec only.
                pl.BlockSpec((tile_n * K_eff, F_in), lambda i: (i, 0)),
                pl.BlockSpec((tile_n, F_in), lambda i: (i, 0)),       # h
                wspec((F_in, F_hid)),                                 # W1^T
                wspec((1, F_hid)),                                    # b1
                wspec((F_hid, F_out)),                                # W2a (pooled half)
                wspec((F_in, F_out)),                                 # W2b (h half)
                wspec((1, F_out)),                                    # b2
            ],
            out_specs=pl.BlockSpec((tile_n, F_out), lambda i: (i, 0)),
        ),
        compiler_params=pltpu.CompilerParams(
            dimension_semantics=("parallel",),
            vmem_limit_bytes=vmem_limit_bytes,
        ),
    )(nei_flat, h, w1_t, b1_2d, w2a, w2b, b2_2d)
    return out


def xavier_uniform(key, shape, gain):
    # torch xavier_uniform_ on weight of shape (fan_out, fan_in)
    fan_out, fan_in = shape
    a = gain * jnp.sqrt(6.0 / (fan_in + fan_out))
    return jax.random.uniform(key, shape, jnp.float32, -a, a)


def reference_jax(nei, h, w1, b1, w2, b2):
    z = jnp.maximum(jnp.einsum('nkf,gf->nkg', nei, w1) + b1, 0.0)
    pooled = jnp.max(z, axis=1)
    cat = jnp.concatenate([pooled, h], axis=1)
    return jnp.maximum(cat @ w2.T + b2, 0.0)


if __name__ == "__main__":
    key = jax.random.PRNGKey(0)
    k_nei, k_h, k_w1, k_b1, k_w2, k_b2 = jax.random.split(key, 6)

    N, K, F_in, F_out = 64, 8, 32, 32       # nodes, neighbors, in_feats, out_feats
    gain = jnp.sqrt(2.0)                    # calculate_gain('relu')

    nei = jax.random.normal(k_nei, (N, K, F_in), jnp.float32)
    h = jax.random.normal(k_h, (N, F_in), jnp.float32)

    # MLP: Linear(in_feats, in_feats, bias=True)
    w1 = xavier_uniform(k_w1, (F_in, F_in), gain)
    b1 = jax.random.normal(k_b1, (F_in,), jnp.float32) * 0.1
    # Aggregator linear: Linear(2*in_feats, out_feats, bias=True)
    w2 = xavier_uniform(k_w2, (F_out, 2 * F_in), gain)
    b2 = jax.random.normal(k_b2, (F_out,), jnp.float32) * 0.1

    ref = reference_jax(nei, h, w1, b1, w2, b2)

    # f32 streams: tight numerical check against the pure-JAX reference.
    out = jax.block_until_ready(pooling_aggregator(nei, h, w1, b1, w2, b2))
    assert out.shape == (N, F_out) and out.dtype == jnp.float32
    assert jnp.allclose(out, ref, atol=1e-4, rtol=1e-4)

    # Ragged node axis: N not a multiple of the tile.  No wrapper padding is done —
    # the last grid block is partial and its out-of-bounds rows are simply dropped.
    N2 = 60
    out_r = jax.block_until_ready(
        pooling_aggregator(nei[:N2], h[:N2], w1, b1, w2, b2))
    assert out_r.shape == (N2, F_out)
    assert jnp.allclose(out_r, ref[:N2], atol=1e-4, rtol=1e-4)

    # bf16 streaming of the big nei/h tensors (halves HBM bytes of the memory-bound
    # stream); W1/W2b are stored bf16 to feed the MXU natively, accumulation and all
    # VPU math stay f32, output stays f32.  The reference uses the same bf16-rounded
    # weights so the comparison is tight.
    nei_bf16 = nei.astype(jnp.bfloat16)
    h_bf16 = h.astype(jnp.bfloat16)
    out_bf16 = jax.block_until_ready(
        pooling_aggregator(nei_bf16, h_bf16, w1, b1, w2, b2))
    w1_r = w1.astype(jnp.bfloat16).astype(jnp.float32)
    w2_r = jnp.concatenate(
        [w2[:, :F_in], w2[:, F_in:].astype(jnp.bfloat16).astype(jnp.float32)], axis=1)
    ref_bf16 = reference_jax(nei_bf16.astype(jnp.float32), h_bf16.astype(jnp.float32),
                             w1_r, b1, w2_r, b2)
    assert out_bf16.shape == (N, F_out) and out_bf16.dtype == jnp.float32
    assert jnp.allclose(out_bf16, ref_bf16, atol=1e-3, rtol=1e-3)

    print("KERNEL_OK")
</pallas_src>

<mosaic_0001>
module attributes {stable_mosaic.version = 11 : i64} {
  func.func @pooling_aggregator_kernel(%arg0: i32, %arg1: memref<128x32xf32, #tpu.memory_space<vmem>>, %arg2: memref<16x32xf32, #tpu.memory_space<vmem>>, %arg3: memref<32x32xf32, #tpu.memory_space<vmem>>, %arg4: memref<1x32xf32, #tpu.memory_space<vmem>>, %arg5: memref<32x32xf32, #tpu.memory_space<vmem>>, %arg6: memref<32x32xf32, #tpu.memory_space<vmem>>, %arg7: memref<1x32xf32, #tpu.memory_space<vmem>>, %arg8: memref<16x32xf32, #tpu.memory_space<vmem>>) attributes {dimension_semantics = [#tpu.dimension_semantics<parallel>], iteration_bounds = array<i64: 4>, scalar_prefetch = 0 : i64, scratch_operands = 0 : i64, tpu.core_type = #tpu.core_type<tc>, window_params = [{transform_indices = @transform_0, window_bounds = array<i64: 128, 32>}, {transform_indices = @transform_1, window_bounds = array<i64: 16, 32>}, {pipeline_mode = #tpu.pipeline_mode<synchronous>, transform_indices = @transform_2, window_bounds = array<i64: 32, 32>}, {pipeline_mode = #tpu.pipeline_mode<synchronous>, transform_indices = @transform_3, window_bounds = array<i64: 1, 32>}, {pipeline_mode = #tpu.pipeline_mode<synchronous>, transform_indices = @transform_4, window_bounds = array<i64: 32, 32>}, {pipeline_mode = #tpu.pipeline_mode<synchronous>, transform_indices = @transform_5, window_bounds = array<i64: 32, 32>}, {pipeline_mode = #tpu.pipeline_mode<synchronous>, transform_indices = @transform_6, window_bounds = array<i64: 1, 32>}, {transform_indices = @transform_7, window_bounds = array<i64: 16, 32>}]} {
    %c0 = arith.constant 0 : index
    %c0_0 = arith.constant 0 : index
    %0 = vector.load %arg1[%c0, %c0_0] : memref<128x32xf32, #tpu.memory_space<vmem>>, vector<128x32xf32>
    %c0_1 = arith.constant 0 : index
    %c0_2 = arith.constant 0 : index
    %1 = vector.load %arg3[%c0_1, %c0_2] : memref<32x32xf32, #tpu.memory_space<vmem>>, vector<32x32xf32>
    %cst = arith.constant dense<0.000000e+00> : vector<128x32xf32>
    %2 = tpu.matmul %0, %1, %cst {dimension_numbers = #tpu.dot_dimension_numbers<[1], [0], [0], [1], [0, 0, 1, 1], [], []>} : vector<128x32xf32>, vector<32x32xf32>, vector<128x32xf32> -> vector<128x32xf32>
    %c0_3 = arith.constant 0 : index
    %c0_4 = arith.constant 0 : index
    %3 = vector.load %arg4[%c0_3, %c0_4] : memref<1x32xf32, #tpu.memory_space<vmem>>, vector<1x32xf32>
    %4 = vector.broadcast %3 : vector<1x32xf32> to vector<128x32xf32>
    %5 = arith.addf %2, %4 : vector<128x32xf32>
    %cst_5 = arith.constant 0.000000e+00 : f32
    %6 = vector.broadcast %cst_5 : f32 to vector<128x32xf32>
    %7 = arith.maximumf %5, %6 : vector<128x32xf32>
    %8 = vector.shape_cast %7 : vector<128x32xf32> to vector<16x8x32xf32>
    %cst_6 = arith.constant dense<0xFF800000> : vector<16x32xf32>
    %9 = vector.multi_reduction <maximumf>, %8, %cst_6 [1] : vector<16x8x32xf32> to vector<16x32xf32>
    %c0_7 = arith.constant 0 : index
    %c0_8 = arith.constant 0 : index
    %10 = vector.load %arg5[%c0_7, %c0_8] : memref<32x32xf32, #tpu.memory_space<vmem>>, vector<32x32xf32>
    %cst_9 = arith.constant dense<0.000000e+00> : vector<16x32xf32>
    %11 = tpu.matmul %9, %10, %cst_9 {dimension_numbers = #tpu.dot_dimension_numbers<[1], [0], [0], [1], [0, 0, 1, 1], [], []>} : vector<16x32xf32>, vector<32x32xf32>, vector<16x32xf32> -> vector<16x32xf32>
    %c0_10 = arith.constant 0 : index
    %c0_11 = arith.constant 0 : index
    %12 = vector.load %arg2[%c0_10, %c0_11] : memref<16x32xf32, #tpu.memory_space<vmem>>, vector<16x32xf32>
    %c0_12 = arith.constant 0 : index
    %c0_13 = arith.constant 0 : index
    %13 = vector.load %arg6[%c0_12, %c0_13] : memref<32x32xf32, #tpu.memory_space<vmem>>, vector<32x32xf32>
    %cst_14 = arith.constant dense<0.000000e+00> : vector<16x32xf32>
    %14 = tpu.matmul %12, %13, %cst_14 {dimension_numbers = #tpu.dot_dimension_numbers<[1], [0], [0], [1], [0, 0, 1, 1], [], []>} : vector<16x32xf32>, vector<32x32xf32>, vector<16x32xf32> -> vector<16x32xf32>
    %15 = arith.addf %11, %14 : vector<16x32xf32>
    %c0_15 = arith.constant 0 : index
    %c0_16 = arith.constant 0 : index
    %16 = vector.load %arg7[%c0_15, %c0_16] : memref<1x32xf32, #tpu.memory_space<vmem>>, vector<1x32xf32>
    %17 = vector.broadcast %16 : vector<1x32xf32> to vector<16x32xf32>
    %18 = arith.addf %15, %17 : vector<16x32xf32>
    %cst_17 = arith.constant 0.000000e+00 : f32
    %19 = vector.broadcast %cst_17 : f32 to vector<16x32xf32>
    %20 = arith.maximumf %18, %19 : vector<16x32xf32>
    %c0_18 = arith.constant 0 : index
    %c0_19 = arith.constant 0 : index
    %21 = vector.load %arg8[%c0_18, %c0_19] : memref<16x32xf32, #tpu.memory_space<vmem>>, vector<16x32xf32>
    tpu.vector_store %arg8[%c0_18, %c0_19], %20 {strides = array<i32>} : memref<16x32xf32, #tpu.memory_space<vmem>>, vector<16x32xf32>,
    return
  }
  func.func @transform_0(%arg0: i32) -> (i32, i32) {
    %c0_i32 = arith.constant 0 : i32
    %c0_i32_0 = arith.constant 0 : i32
    return %arg0, %c0_i32 : i32, i32
  }
  func.func @transform_1(%arg0: i32) -> (i32, i32) {
    %c0_i32 = arith.constant 0 : i32
    %c0_i32_0 = arith.constant 0 : i32
    return %arg0, %c0_i32 : i32, i32
  }
  func.func @transform_2(%arg0: i32) -> (i32, i32) {
    %c0_i32 = arith.constant 0 : i32
    %c0_i32_0 = arith.constant 0 : i32
    %c0_i32_1 = arith.constant 0 : i32
    return %c0_i32, %c0_i32_0 : i32, i32
  }
  func.func @transform_3(%arg0: i32) -> (i32, i32) {
    %c0_i32 = arith.constant 0 : i32
    %c0_i32_0 = arith.constant 0 : i32
    %c0_i32_1 = arith.constant 0 : i32
    return %c0_i32, %c0_i32_0 : i32, i32
  }
  func.func @transform_4(%arg0: i32) -> (i32, i32) {
    %c0_i32 = arith.constant 0 : i32
    %c0_i32_0 = arith.constant 0 : i32
    %c0_i32_1 = arith.constant 0 : i32
    return %c0_i32, %c0_i32_0 : i32, i32
  }
  func.func @transform_5(%arg0: i32) -> (i32, i32) {
    %c0_i32 = arith.constant 0 : i32
    %c0_i32_0 = arith.constant 0 : i32
    %c0_i32_1 = arith.constant 0 : i32
    return %c0_i32, %c0_i32_0 : i32, i32
  }
  func.func @transform_6(%arg0: i32) -> (i32, i32) {
    %c0_i32 = arith.constant 0 : i32
    %c0_i32_0 = arith.constant 0 : i32
    %c0_i32_1 = arith.constant 0 : i32
    return %c0_i32, %c0_i32_0 : i32, i32
  }
  func.func @transform_7(%arg0: i32) -> (i32, i32) {
    %c0_i32 = arith.constant 0 : i32
    %c0_i32_0 = arith.constant 0 : i32
    return %arg0, %c0_i32 : i32, i32
  }
}

</mosaic_0001>

<bundles_post_ra>
// kernel: tpu_custom_call.1
= control target key start
LH: loop header
LB: loop body
LE: loop exit
PB: predicated region body
PF: predicated region fallthrough
CT: control target
= control target key end

     0   :  { %s854_s24 = smov 0   ;;  %s1024_s0 = inlined_call_operand.vmem [shape: f32[512,32], index: 0, kind: input, shape index: {}]   ;;  %s1025_s1 = inlined_call_operand.vmem [shape: f32[64,32], index: 1, kind: input, shape index: {}]   ;;  %s1026_s2 = inlined_call_operand.vmem [shape: f32[32,32], index: 2, kind: input, shape index: {}]   ;;  %s1027_s3 = inlined_call_operand.vmem [shape: f32[1,32], index: 3, kind: input, shape index: {}]   ;;  %s1028_s4 = inlined_call_operand.vmem [shape: f32[32,32], index: 4, kind: input, shape index: {}]   ;;  %s1029_s5 = inlined_call_operand.vmem [shape: f32[32,32], index: 5, kind: input, shape index: {}]   ;;  %s1030_s6 = inlined_call_operand.vmem [shape: f32[1,32], index: 6, kind: input, shape index: {}]   ;;  %s1031_s7 = inlined_call_operand.vmem [shape: f32[64,32], index: 7, kind: output, shape index: {}]  }
   0x1 LB: > { %s751_s25 = sadd.s32 4294967295, %s812_s24   ;;  %p755_p0 = scmp.ge.s32.totalorder %s812_s24, 1  ;;  %s812_s24 = sphi %s854_s24, %s17_s24  }
   0x2   : > { %p249_p1 = scmp.lt.s32.totalorder %s812_s24, 5 }
   0x4   : > { %p250_p2 = pnand %p755_p0, %p249_p1 }
   0x5   : > { %s756_s30 = sshll.u32 (!%p250_p2), %s751_s25, 4  ;;  %s758_s18 = sshll.u32 (!%p250_p2), %s751_s25, 1 }
   0x6   : > { %253 = sbr.rel (%p250_p2) target bundleno = 345 (0x159), region = 48  ;;  %p287_p3 = scmp.lt.s32.totalorder (!%p250_p2), %s756_s30, 63 }
   0x7   : > { %p293_p4 = scmp.lt.s32.totalorder (!%p250_p2), %s758_s18, 7 }
   0xb   : > { %v323_v0 = vld [vmem:[%s1026_s2 + $0x18] sm:$0xff]  ;;  %v322_v1 = vld [vmem:[%s1026_s2 + $0x10] sm:$0xff]  ;;  %v321_v2 = vld [vmem:[%s1026_s2 + $0x8] sm:$0xff]  ;;  %s1033_s30 = smov (!%p287_p3, %s756_s30), 63  ;;  %vm328_vm0 = vcmask 261120   ;;  %s1035_s18 = smov (!%p293_p4, %s758_s18), 7 }
   0xc   : > { %389 = vmatpush.msra.mxu0 %v323_v0  ;;  %785 = vmatpush.msra.mxu2 %v323_v0  ;;  %v320_v3 = vld [vmem:[%s1026_s2] sm:$0xff]  ;;  %s757_s12 = sshll.u32 %s1033_s30, 3  ;;  %v573_v38 = vld [vmem:[%s1028_s4 + $0x18] sm:$0xff]  ;;  %v572_v47 = vld [vmem:[%s1028_s4 + $0x10] sm:$0xff]  ;;  %s759_s26 = sshll.u32 %s1035_s18, 3  ;;  %vm625_vm1 = vcmask 1041409  }
   0xd   : > { %786 = vmatpush.msra.mxu3 %v323_v0  ;;  %784 = vmatpush.msra.mxu1 %v323_v0  ;;  %s879_s15 = scalar_lea.vmem %s1024_s0, %s757_s12  ;;  %v916_v20 = vld [vmem:[%s1027_s3] ss:$0 sm:$0xff]  ;;  %v579_v46 = vld [vmem:[%s1029_s5 + $0x18] sm:$0xff]  ;;  %v571_v53 = vld [vmem:[%s1028_s4 + $0x8] sm:$0xff]  ;;  %s957_s12 = scalar_lea.vmem %s1025_s1, %s759_s26  ;;  %vm627_vm2 = vcmask 1042434   ;;  %vm629_vm3 = vcmask 1043459  }
   0xe   : > { %390 = vmatpush.msra.mxu0 %v322_v1  ;;  %788 = vmatpush.msra.mxu2 %v322_v1  ;;  %v304_v4 = vld [vmem:[%s879_s15] sm:$0xff]  ;;  %v315_v6 = vld [vmem:[%s879_s15 + $0x58] sm:$0xff]  ;;  %v309_v7 = vld [vmem:[%s879_s15 + $0x28] sm:$0xff]  ;;  %vm631_vm4 = vcmask 1044484   ;;  %vm633_vm5 = vcmask 1045509   ;;  %vm637_vm6 = vcmask 1047559   ;;  %s302_s22 = scalar_lea.vmem %s1031_s7, %s759_s26 }
   0xf   : > { %789 = vmatpush.msra.mxu3 %v322_v1  ;;  %787 = vmatpush.msra.mxu1 %v322_v1  ;;  %v312_v5 = vld [vmem:[%s879_s15 + $0x40] sm:$0xff]  ;;  %v305_v8 = vld [vmem:[%s879_s15 + $0x8] sm:$0xff]  ;;  %v310_v11 = vld [vmem:[%s879_s15 + $0x30] sm:$0xff]  ;;  %vm635_vm7 = vcmask 1046534  }
  0x10   : > { %391 = vmatpush.msra.mxu0 %v321_v2  ;;  %791 = vmatpush.msra.mxu2 %v321_v2  ;;  %v313_v9 = vld [vmem:[%s879_s15 + $0x48] sm:$0xff]  ;;  %v316_v10 = vld [vmem:[%s879_s15 + $0x60] sm:$0xff]  ;;  %v306_v12 = vld [vmem:[%s879_s15 + $0x10] sm:$0xff] }
  0x11   : > { %792 = vmatpush.msra.mxu3 %v321_v2  ;;  %790 = vmatpush.msra.mxu1 %v321_v2  ;;  %v314_v13 = vld [vmem:[%s879_s15 + $0x50] sm:$0xff]  ;;  %v317_v14 = vld [vmem:[%s879_s15 + $0x68] sm:$0xff]  ;;  %v311_v15 = vld [vmem:[%s879_s15 + $0x38] sm:$0xff] }
  0x12   : > { %392 = vmatpush.msra.mxu0 %v320_v3  ;;  %794 = vmatpush.msra.mxu2 %v320_v3  ;;  %v307_v16 = vld [vmem:[%s879_s15 + $0x18] sm:$0xff]  ;;  %v318_v17 = vld [vmem:[%s879_s15 + $0x70] sm:$0xff]  ;;  %v308_v18 = vld [vmem:[%s879_s15 + $0x20] sm:$0xff] }
  0x13   : > { %795 = vmatpush.msra.mxu3 %v320_v3  ;;  %762 = vmatmul.msk.f32.vlgmr.msra.gmra.mxu0 %vm328_vm0, %v304_v4  ;;  %v319_v19 = vld [vmem:[%s879_s15 + $0x78] sm:$0xff]  ;;  %v578_v57 = vld [vmem:[%s1029_s5 + $0x10] sm:$0xff]  ;;  %v577_v58 = vld [vmem:[%s1029_s5 + $0x8] sm:$0xff] }
  0x14   : > { %770 = vmatmul.msk.f32.vlgmr.msra.gmra.mxu2 %vm328_vm0, %v312_v5  ;;  %773 = vmatmul.msk.f32.vlgmr.msra.gmra.mxu3 %vm328_vm0, %v315_v6  ;;  %v570_v61 = vld [vmem:[%s1028_s4] sm:$0xff] }
  0x15   : > { %793 = vmatpush.msra.mxu1 %v320_v3  ;;  %662 = vmatpush.msrb.mxu2 %v573_v38  ;;  %v576_v3 = vld [vmem:[%s1029_s5] sm:$0xff] }
  0x16   : > { %767 = vmatmul.msk.f32.vlgmr.msra.gmra.mxu1 %vm328_vm0, %v309_v7 }
  0x17   : > { %598 = vmatpush.msrb.mxu1 %v579_v46  ;;  %663 = vmatpush.msrb.mxu2 %v572_v47 }
  0x19   : > { %664 = vmatpush.msrb.mxu2 %v571_v53  ;;  %599 = vmatpush.msrb.mxu1 %v578_v57 }
  0x1b   : > { %763 = vmatmul.msk.f32.gmra.mxu0 %vm328_vm0, %v305_v8  ;;  %665 = vmatpush.msrb.mxu2 %v570_v61 }
  0x1c   : > { %771 = vmatmul.msk.f32.gmra.mxu2 %vm328_vm0, %v313_v9  ;;  %774 = vmatmul.msk.f32.gmra.mxu3 %vm328_vm0, %v316_v10  ;;  %v574_v9 = vld [vmem:[%s957_s12] sm:$0xff] }
  0x1d   : > { %600 = vmatpush.msrb.mxu1 %v577_v58 }
  0x1e   : > { %768 = vmatmul.msk.f32.gmra.mxu1 %vm328_vm0, %v310_v11 }
  0x1f   : > { %601 = vmatpush.msrb.mxu1 %v576_v3 }
  0x23   : > { %764 = vmatmul.msk.f32.gmra.mxu0 %vm328_vm0, %v306_v12 }
  0x24   : > { %772 = vmatmul.msk.f32.gmra.mxu2 %vm328_vm0, %v314_v13  ;;  %775 = vmatmul.msk.f32.gmra.mxu3 %vm328_vm0, %v317_v14 }
  0x26   : > { %769 = vmatmul.msk.f32.gmra.mxu1 %vm328_vm0, %v311_v15 }
  0x2b   : > { %765 = vmatmul.msk.f32.gmra.mxu0 %vm328_vm0, %v307_v16 }
  0x2c   : > { %776 = vmatmul.msk.f32.gmra.mxu3 %vm328_vm0, %v318_v17 }
  0x2e   : > { %778 = vmatmul.msk.f32.vlgmr.msrb.gmra.mxu1 %vm328_vm0, %v574_v9 }
  0x33   : > { %766 = vmatmul.msk.f32.gmra.mxu0 %vm328_vm0, %v308_v18 }
  0x34   : > { %777 = vmatmul.msk.f32.gmra.mxu3 %vm328_vm0, %v319_v19 }
  0x90   : > { %v394_v21 = vpop.f32.mrf.mxu0 }
  0x91   : > { %v395_v22 = vadd.f32 %v916_v20, %v394_v21 }
  0x93   : > { %v409_v23 = vpop.f32.mrf.mxu1  ;;  %v442_v24 = vmax.f32 %v395_v22, 0.0 }
  0x94   : > { %v410_v29 = vadd.f32 %v916_v20, %v409_v23 }
  0x95   : > { %v458_v28 = vsel %vm328_vm0, %v442_v24, -inf }
  0x96   : > { %v459_v32 = vrot.slane %v458_v28, 4  ;;  %v447_v34 = vmax.f32 %v410_v29, 0.0 }
  0x97   : > { %v418_v25 = vpop.f32.mrf.mxu2  ;;  %v427_v26 = vpop.f32.mrf.mxu3 }
  0x98   : > { %v397_v27 = vpop.f32.mrf.mxu0  ;;  %v419_v31 = vadd.f32 %v916_v20, %v418_v25  ;;  %v428_v35 = vadd.f32 %v916_v20, %v427_v26  ;;  %v460_v42 = vmax.f32 %v458_v28, %v459_v32  ;;  %v493_v45 = vsel %vm328_vm0, %v447_v34, -inf }
  0x99   : > { %v398_v33 = vadd.f32 %v916_v20, %v397_v27  ;;  %v494_v55 = vrot.slane %v493_v45, 4 }
  0x9a   : > { %v450_v39 = vmax.f32 %v419_v31, 0.0  ;;  %v453_v48 = vmax.f32 %v428_v35, 0.0  ;;  %v461_v54 = vrot.slane %v460_v42, 2 }
  0x9b   : > { %v412_v30 = vpop.f32.mrf.mxu1  ;;  %v443_v44 = vmax.f32 %v398_v33, 0.0  ;;  %v495_v12 = vmax.f32 %v493_v45, %v494_v55 }
  0x9c   : > { %v514_v50 = vsel %vm328_vm0, %v450_v39, -inf  ;;  %v413_v52 = vadd.f32 %v916_v20, %v412_v30  ;;  %v535_v63 = vsel %vm328_vm0, %v453_v48, -inf  ;;  %v462_v10 = vmax.f32 %v460_v42, %v461_v54 }
  0x9d   : > { %v465_v59 = vsel %vm328_vm0, %v443_v44, -inf  ;;  %v515_v62 = vrot.slane %v514_v50, 4  ;;  %v536_v14 = vrot.slane %v535_v63, 4  ;;  %v496_v28 = vrot.slane %v495_v12, 2  ;;  %v575_v44 = vld [vmem:[%s957_s12 + $0x8] sm:$0xff] }
  0x9e   : > { %v448_v5 = vmax.f32 %v413_v52, 0.0  ;;  %v466_v11 = vrot.slane %v465_v59, 4  ;;  %v463_v26 = vrot.slane %v462_v10, 1  ;;  %779 = vmatmul.msk.f32.gmra.mxu1 %vm328_vm0, %v575_v44 }
  0x9f   : > { %v421_v36 = vpop.f32.mrf.mxu2  ;;  %v430_v37 = vpop.f32.mrf.mxu3  ;;  %v516_v18 = vmax.f32 %v514_v50, %v515_v62  ;;  %v537_v30 = vmax.f32 %v535_v63, %v536_v14 }
  0xa0   : > { %v422_v40 = vadd.f32 %v916_v20, %v421_v36  ;;  %v400_v41 = vpop.f32.mrf.mxu0  ;;  %v431_v60 = vadd.f32 %v916_v20, %v430_v37  ;;  %v500_v22 = vsel %vm328_vm0, %v448_v5, -inf  ;;  %v467_v27 = vmax.f32 %v465_v59, %v466_v11 }
  0xa1   : > { %v401_v43 = vadd.f32 %v916_v20, %v400_v41  ;;  %v517_v34 = vrot.slane %v516_v18, 2  ;;  %v501_v36 = vrot.slane %v500_v22, 4  ;;  %v986_v53 = vmax.f32 %v462_v10, %v463_v26 }
  0xa2   : > { %v451_v51 = vmax.f32 %v422_v40, 0.0  ;;  %v454_v15 = vmax.f32 %v431_v60, 0.0  ;;  %v468_v45 = vrot.slane %v467_v27, 2 }
  0xa3   : > { %v444_v49 = vmax.f32 %v401_v43, 0.0  ;;  %v415_v56 = vpop.f32.mrf.mxu1  ;;  %v502_v55 = vmax.f32 %v500_v22, %v501_v36  ;;  %v518_v61 = vmax.f32 %v516_v18, %v517_v34 }
  0xa4   : > { %v521_v4 = vsel %vm328_vm0, %v451_v51, -inf  ;;  %v416_v8 = vadd.f32 %v916_v20, %v415_v56  ;;  %v542_v31 = vsel %vm328_vm0, %v454_v15, -inf  ;;  %v469_v62 = vmax.f32 %v467_v27, %v468_v45 }
  0xa5   : > { %v472_v0 = vsel %vm328_vm0, %v444_v49, -inf  ;;  %v522_v19 = vrot.slane %v521_v4, 4  ;;  %v543_v46 = vrot.slane %v542_v31, 4  ;;  %v983_v49 = vmax.f32 %v495_v12, %v496_v28 }
  0xa6   : > { %v473_v16 = vrot.slane %v472_v0, 4  ;;  %v449_v25 = vmax.f32 %v416_v8, 0.0  ;;  %v503_v10 = vrot.slane %v502_v55, 2  ;;  %v519_v14 = vrot.slane %v518_v61, 1 }
  0xa7   : > { %v424_v1 = vpop.f32.mrf.mxu2  ;;  %v433_v2 = vpop.f32.mrf.mxu3  ;;  %v523_v35 = vmax.f32 %v521_v4, %v522_v19  ;;  %v544_v63 = vmax.f32 %v542_v31, %v543_v46  ;;  %v498_v5 = vrot.slane %v983_v49, 1  ;;  %v470_v15 = vrot.slane %v469_v62, 1 }
  0xa8   : > { %v425_v6 = vadd.f32 %v916_v20, %v424_v1  ;;  %v403_v7 = vpop.f32.mrf.mxu0  ;;  %v434_v24 = vadd.f32 %v916_v20, %v433_v2  ;;  %v474_v32 = vmax.f32 %v472_v0, %v473_v16  ;;  %v507_v41 = vsel %vm328_vm0, %v449_v25, -inf }
  0xa9   : > { %v404_v13 = vadd.f32 %v916_v20, %v403_v7  ;;  %v508_v48 = vrot.slane %v507_v41, 4  ;;  %v524_v54 = vrot.slane %v523_v35, 2  ;;  %v538_v1 = vrot.slane %v537_v30, 2 }
  0xaa   : > { %v452_v17 = vmax.f32 %v425_v6, 0.0  ;;  %v455_v40 = vmax.f32 %v434_v24, 0.0  ;;  %v475_v50 = vrot.slane %v474_v32, 2  ;;  %v545_v16 = vrot.slane %v544_v63, 2 }
  0xab   : > { %v445_v21 = vmax.f32 %v404_v13, 0.0  ;;  %v509_v0 = vmax.f32 %v507_v41, %v508_v48  ;;  %v525_v6 = vmax.f32 %v523_v35, %v524_v54  ;;  %v504_v27 = vmax.f32 %v502_v55, %v503_v10 }
  0xac   : > { %v528_v23 = vsel %vm328_vm0, %v452_v17, -inf  ;;  %v549_v58 = vsel %vm328_vm0, %v455_v40, -inf  ;;  %v476_v2 = vmax.f32 %v474_v32, %v475_v50  ;;  %v471_v32 = vmax.f32 %v469_v62, %v470_v15  ;;  %v805_v15 = vld [vmem:[%s1030_s6] ss:$0 sm:$0xff] }
  0xad   : > { %v529_v29 = vrot.slane %v528_v23, 4  ;;  %v479_v33 = vsel %vm328_vm0, %v445_v21, -inf  ;;  %v550_v7 = vrot.slane %v549_v58, 4  ;;  %v510_v17 = vrot.slane %v509_v0, 2 }
  0xae   : > { %v480_v37 = vrot.slane %v479_v33, 4  ;;  %v477_v18 = vrot.slane %v476_v2, 1  ;;  %v526_v24 = vrot.slane %v525_v6, 1  ;;  %v546_v35 = vmax.f32 %v544_v63, %v545_v16 }
  0xaf   : > { %v436_v38 = vpop.f32.mrf.mxu3  ;;  %v530_v39 = vmax.f32 %v528_v23, %v529_v29  ;;  %v539_v23 = vmax.f32 %v537_v30, %v538_v1  ;;  %v551_v25 = vmax.f32 %v549_v58, %v550_v7 }
  0xb0   : > { %v437_v42 = vadd.f32 %v916_v20, %v436_v38  ;;  %v406_v43 = vpop.f32.mrf.mxu0  ;;  %v481_v47 = vmax.f32 %v479_v33, %v480_v37  ;;  %v511_v33 = vmax.f32 %v509_v0, %v510_v17  ;;  %v478_v36 = vmax.f32 %v476_v2, %v477_v18 }
  0xb1   : > { %v407_v52 = vadd.f32 %v916_v20, %v406_v43  ;;  %v531_v57 = vrot.slane %v530_v39, 2  ;;  %v552_v30 = vrot.slane %v551_v25, 2  ;;  %v505_v43 = vrot.slane %v504_v27, 1 }
  0xb2   : > { %v456_v51 = vmax.f32 %v437_v42, 0.0  ;;  %v482_v56 = vrot.slane %v481_v47, 2  ;;  %v499_v42 = vmax.f32 %v983_v49, %v498_v5  ;;  %v540_v46 = vrot.slane %v539_v23, 1 }
  0xb3   : > { %v446_v60 = vmax.f32 %v407_v52, 0.0  ;;  %v532_v11 = vmax.f32 %v530_v39, %v531_v57  ;;  %v527_v39 = vmax.f32 %v525_v6, %v526_v24  ;;  %v512_v48 = vrot.slane %v511_v33, 1 }
  0xb4   : > { %v556_v59 = vsel %vm328_vm0, %v456_v51, -inf  ;;  %v483_v8 = vmax.f32 %v481_v47, %v482_v56  ;;  %v626_v47 = vsel %vm625_vm1, %v471_v32, %v986_v53  ;;  %v547_v51 = vrot.slane %v546_v35, 1 }
  0xb5   : > { %v557_v3 = vrot.slane %v556_v59, 4  ;;  %v486_v4 = vsel %vm328_vm0, %v446_v60, -inf  ;;  %v533_v28 = vrot.slane %v532_v11, 1  ;;  %v628_v52 = vsel %vm627_vm2, %v478_v36, %v626_v47 }
  0xb6   : > { %v487_v12 = vrot.slane %v486_v4, 4  ;;  %v484_v26 = vrot.slane %v483_v8, 1  ;;  %v553_v57 = vmax.f32 %v551_v25, %v552_v30  ;;  %v541_v53 = vmax.f32 %v539_v23, %v540_v46 }
  0xb7   : > { %v439_v9 = vpop.f32.mrf.mxu3  ;;  %v558_v19 = vmax.f32 %v556_v59, %v557_v3  ;;  %v534_v44 = vmax.f32 %v532_v11, %v533_v28  ;;  %v506_v59 = vmax.f32 %v504_v27, %v505_v43  ;;  %v513_v62 = vmax.f32 %v511_v33, %v512_v48 }
  0xb8   : > { %v440_v13 = vadd.f32 %v916_v20, %v439_v9  ;;  %v488_v21 = vmax.f32 %v486_v4, %v487_v12  ;;  %v520_v20 = vmax.f32 %v518_v61, %v519_v14  ;;  %v485_v40 = vmax.f32 %v483_v8, %v484_v26  ;;  %v603_v14 = vpop.f32.mrf.mxu1 }
  0xb9   : > { %v559_v37 = vrot.slane %v558_v19, 2  ;;  %v554_v2 = vrot.slane %v553_v57, 1  ;;  %v548_v6 = vmax.f32 %v546_v35, %v547_v51 }
  0xba   : > { %v457_v22 = vmax.f32 %v440_v13, 0.0  ;;  %v489_v29 = vrot.slane %v488_v21, 2  ;;  %v639_v56 = vsel %vm625_vm1, %v527_v39, %v520_v20  ;;  %v630_v49 = vsel %vm629_vm3, %v485_v40, %v628_v52 }
  0xbb   : > { %v560_v54 = vmax.f32 %v558_v19, %v559_v37  ;;  %v640_v60 = vsel %vm627_vm2, %v534_v44, %v639_v56  ;;  %v555_v9 = vmax.f32 %v553_v57, %v554_v2 }
  0xbc   : > { %v563_v31 = vsel %vm328_vm0, %v457_v22, -inf  ;;  %v490_v38 = vmax.f32 %v488_v21, %v489_v29  ;;  %v641_v5 = vsel %vm629_vm3, %v541_v53, %v640_v60 }
  0xbd   : > { %v564_v34 = vrot.slane %v563_v31, 4  ;;  %v561_v0 = vrot.slane %v560_v54, 1  ;;  %v642_v8 = vsel %vm631_vm4, %v548_v6, %v641_v5 }
  0xbe   : > { %v491_v45 = vrot.slane %v490_v38, 1  ;;  %v643_v11 = vsel %vm633_vm5, %v555_v9, %v642_v8 }
  0xbf   : > { %v565_v41 = vmax.f32 %v563_v31, %v564_v34  ;;  %v562_v7 = vmax.f32 %v560_v54, %v561_v0 }
  0xc0   : > { %v492_v55 = vmax.f32 %v490_v38, %v491_v45 }
  0xc1   : > { %v566_v50 = vrot.slane %v565_v41, 2  ;;  %v644_v12 = vsel %vm635_vm7, %v562_v7, %v643_v11 }
  0xc2   : > { %v632_v61 = vsel %vm631_vm4, %v492_v55, %v630_v49 }
  0xc3   : > { %v567_v58 = vmax.f32 %v565_v41, %v566_v50  ;;  %v634_v63 = vsel %vm633_vm5, %v499_v42, %v632_v61 }
  0xc4   : > { %v636_v1 = vsel %vm635_vm7, %v506_v59, %v634_v63 }
  0xc5   : > { %v568_v3 = vrot.slane %v567_v58, 1  ;;  %v638_v4 = vsel %vm637_vm6, %v513_v62, %v636_v1 }
  0xc6   : > { %780 = vmatmul.msk.f32.vlgmr.msrb.gmra.mxu2 %vm328_vm0, %v638_v4 }
  0xc7   : > { %v569_v10 = vmax.f32 %v567_v58, %v568_v3 }
  0xc9   : > { %v645_v13 = vsel %vm637_vm6, %v569_v10, %v644_v12 }
  0xce   : > { %781 = vmatmul.msk.f32.gmra.mxu2 %vm328_vm0, %v645_v13 }
 0x11b   : > { %v606_v21 = vpop.f32.mrf.mxu1 }
 0x149   : > { %v667_v16 = vpop.f32.mrf.mxu2 }
 0x14a   : > { %v668_v17 = vadd.f32 %v667_v16, %v603_v14 }
 0x14c   : > { %v677_v18 = vadd.f32 %v805_v15, %v668_v17 }
 0x14e   : > { %v679_v19 = vmax.f32 %v677_v18, 0.0 }
 0x150   : > { %681 = vst.msk [vmem:[%s302_s22] sm:$0xff] %vm328_vm0, %v679_v19 }
 0x151   : > { %v670_v22 = vpop.f32.mrf.mxu2 }
 0x152   : > { %v671_v23 = vadd.f32 %v670_v22, %v606_v21 }
 0x154   : > { %v678_v24 = vadd.f32 %v805_v15, %v671_v23 }
 0x156   : > { %v680_v25 = vmax.f32 %v678_v24, 0.0 }
 0x158   : > { %682 = vst.msk [vmem:[%s302_s22 + $0x8] sm:$0xff] %vm328_vm0, %v680_v25 }
 0x159 PF: > { %s17_s24 = sadd.s32 1, %s812_s24  }
 0x15a   : > { %p14_p5 = scmp.ge.s32.totalorder %s17_s24, 6  }
 0x15c   :  { %16 = sbr.rel (!%p14_p5) target bundleno = 1 (0x1), region = 81 }

</bundles_post_ra>
